<compile_context>
chip_gen: v7x
topology: tpu7x:2x2x1
jax: 0.10.0
libtpu: 0.0.40
codegen_flags: <defaults>
</compile_context>

<pallas_src>
import jax
import jax.numpy as jnp
from jax.experimental import pallas as pl
from jax.experimental.pallas import tpu as pltpu


def _make_kernel(n_total, tile_n, n_chan):
    needs_tail = (n_total % tile_n) != 0

    def kernel(yp_ref, yt_ref, sc_ref, out_ref, num_acc, cnt_acc):
        i = pl.program_id(1)
        n_i = pl.num_programs(1)

        # ---- init accumulators on the first spatial tile of this batch ----
        @pl.when(i == 0)
        def _init():
            num_acc[...] = jnp.zeros_like(num_acc)
            cnt_acc[...] = jnp.zeros_like(cnt_acc)

        # ---- active-pixel mask (float equality, same as PyTorch `score == 1`) ----
        score = sc_ref[...].astype(jnp.float32)                     # (1, 1, T)
        active = score == 1.0                                       # (1, 1, T)
        if needs_tail:
            # Only emitted when the last tile is partial: mask out padded lanes.
            lane = jax.lax.broadcasted_iota(jnp.int32, (1, 1, tile_n), 2)
            valid = (i * tile_n + lane) < n_total
            active = jnp.logical_and(valid, active)
        cnt_acc[...] += active.astype(jnp.float32)

        # ---- smooth-L1 (beta = 1.0) on all distance channels ----
        yp = yp_ref[...].astype(jnp.float32)                        # (1, C, T)
        yt = yt_ref[...].astype(jnp.float32)                        # (1, C, T)
        diff = yp - yt
        ad = jnp.abs(diff)
        sl1 = jnp.where(ad < 1.0, 0.5 * diff * diff, ad - 0.5)
        # broadcast of the (1,1,T) mask along the channel (sublane) dim is cheap;
        # jnp.where (select) also blocks NaN/garbage from masked / padded lanes.
        num_acc[...] += jnp.where(active, sl1, 0.0)

        # ---- finalize: single XLU collapse + lane-dense pack, once per batch ----
        @pl.when(i == n_i - 1)
        def _fin():
            num = jnp.sum(num_acc[...])
            den = jnp.float32(n_chan) * jnp.sum(cnt_acc[...])
            lane_o = jax.lax.broadcasted_iota(jnp.int32, (1, 1, 128), 2)
            out = (jnp.where(lane_o == 0, num, 0.0)
                   + jnp.where(lane_o == 1, den, 0.0))
            out_ref[...] = out.astype(jnp.float32)

    return kernel


def _pick_tile_n(n_pad, n_chan, in_itemsize, sc_itemsize,
                 budget_bytes=12 * 1024 * 1024):
    """Largest 128-multiple tile whose double-buffered footprint fits the budget."""
    per_lane = (2 * (n_chan * in_itemsize) * 2      # y_pred + y_true blocks, 2 bufs
                + 2 * sc_itemsize                   # score block, 2 bufs
                + (n_chan + 1) * 4)                 # f32 accumulators
    tile = budget_bytes // per_lane
    tile = max(128, (int(tile) // 128) * 128)
    return min(tile, n_pad)


def smooth_l1_active_loss(y_pred, y_true, y_true_score, *, tile_n=None):
    """Forward of the PyTorch `L1` module (SmoothL1 over score==1 positions)."""
    B, C, H, W = y_pred.shape
    assert y_true.shape == (B, C, H, W)
    assert y_true_score.shape == (B, H, W)
    N = H * W

    # Free reshapes only — keep native dtypes in HBM (cast happens in-kernel).
    yp = y_pred.reshape(B, C, N)
    yt = y_true.reshape(B, C, N)
    sc = y_true_score.reshape(B, 1, N)

    n_pad = -(-N // 128) * 128
    in_itemsize = jnp.dtype(y_pred.dtype).itemsize
    sc_itemsize = jnp.dtype(y_true_score.dtype).itemsize
    if tile_n is None:
        tile_n = _pick_tile_n(n_pad, C, in_itemsize, sc_itemsize)
    tile_n = max(128, (int(tile_n) // 128) * 128)
    tile_n = min(tile_n, n_pad)
    n_tiles = pl.cdiv(N, tile_n)

    kernel = _make_kernel(N, tile_n, C)

    grid_spec = pltpu.PrefetchScalarGridSpec(
        num_scalar_prefetch=0,
        grid=(B, n_tiles),
        in_specs=[
            pl.BlockSpec((1, C, tile_n), lambda b, i: (b, 0, i)),
            pl.BlockSpec((1, C, tile_n), lambda b, i: (b, 0, i)),
            pl.BlockSpec((1, 1, tile_n), lambda b, i: (b, 0, i)),
        ],
        out_specs=pl.BlockSpec((1, 1, 128), lambda b, i: (b, 0, 0)),
        scratch_shapes=[
            pltpu.VMEM((1, C, tile_n), jnp.float32),   # masked smooth-L1 accumulator
            pltpu.VMEM((1, 1, tile_n), jnp.float32),   # active-pixel count accumulator
        ],
    )

    bytes_accessed = (yp.size * in_itemsize + yt.size * in_itemsize
                      + sc.size * sc_itemsize + B * 128 * 4)
    cost = pl.CostEstimate(flops=B * N * (8 * C + 2),
                           transcendentals=0,
                           bytes_accessed=bytes_accessed)

    packed = pl.pallas_call(
        kernel,
        grid_spec=grid_spec,
        out_shape=jax.ShapeDtypeStruct((B, 1, 128), jnp.float32),
        compiler_params=pltpu.CompilerParams(
            dimension_semantics=("parallel", "arbitrary"),
            vmem_limit_bytes=32 * 1024 * 1024,
        ),
        cost_estimate=cost,
    )(yp, yt, sc)

    num = jnp.sum(packed[:, 0, 0])
    den = jnp.sum(packed[:, 0, 1])
    # NOTE: if no pixel has score == 1, this is NaN — identical to PyTorch's
    # SmoothL1Loss over an empty selection.
    return num / den


def _reference(y_pred, y_true, y_true_score):
    """Pure-JAX replica of the PyTorch L1.forward, for validation."""
    yp = y_pred.astype(jnp.float32)
    yt = y_true.astype(jnp.float32)
    mask = (y_true_score.astype(jnp.float32) == 1.0)             # [B, H, W]
    mask4 = jnp.broadcast_to(mask[:, None], yp.shape)            # [B, 4, H, W]
    diff = yp - yt
    ad = jnp.abs(diff)
    sl1 = jnp.where(ad < 1.0, 0.5 * diff * diff, ad - 0.5)
    num = jnp.sum(jnp.where(mask4, sl1, 0.0))
    den = jnp.sum(mask4.astype(jnp.float32))
    return num / den


if __name__ == "__main__":
    key = jax.random.PRNGKey(0)
    k1, k2, k3 = jax.random.split(key, 3)
    B, C, H, W = 2, 4, 16, 16

    y_pred = jax.random.uniform(k1, (B, C, H, W), minval=0.0, maxval=3.0)
    y_true = jax.random.uniform(k2, (B, C, H, W), minval=0.0, maxval=3.0)
    y_true_score = (jax.random.uniform(k3, (B, H, W)) > 0.5).astype(jnp.float32)

    # 1) single-tile path (auto tile selection)
    loss = jax.block_until_ready(smooth_l1_active_loss(y_pred, y_true, y_true_score))
    ref = _reference(y_pred, y_true, y_true_score)
    assert jnp.allclose(loss, ref, rtol=1e-5, atol=1e-6), (loss, ref)

    # 2) multi-tile path with a ragged tail (N = 400, tile_n = 128 -> 4 tiles)
    H2, W2 = 20, 20
    yp2 = jax.random.uniform(k1, (B, C, H2, W2), minval=0.0, maxval=3.0)
    yt2 = jax.random.uniform(k2, (B, C, H2, W2), minval=0.0, maxval=3.0)
    sc2 = (jax.random.uniform(k3, (B, H2, W2)) > 0.5).astype(jnp.float32)
    loss2 = jax.block_until_ready(smooth_l1_active_loss(yp2, yt2, sc2, tile_n=128))
    ref2 = _reference(yp2, yt2, sc2)
    assert jnp.allclose(loss2, ref2, rtol=1e-5, atol=1e-6), (loss2, ref2)

    # 3) bf16 inputs stay bf16 in HBM; f32 cast happens in-kernel
    loss3 = jax.block_until_ready(
        smooth_l1_active_loss(y_pred.astype(jnp.bfloat16),
                              y_true.astype(jnp.bfloat16),
                              y_true_score.astype(jnp.bfloat16)))
    ref3 = _reference(y_pred.astype(jnp.bfloat16), y_true.astype(jnp.bfloat16),
                      y_true_score.astype(jnp.bfloat16))
    assert jnp.allclose(loss3, ref3, rtol=2e-2, atol=2e-3), (loss3, ref3)

    print("KERNEL_OK")
</pallas_src>

<mosaic_0001>
module attributes {stable_mosaic.version = 11 : i64} {
  func.func @kernel(%arg0: i32, %arg1: i32, %arg2: memref<1x4x256xf32, #tpu.memory_space<vmem>>, %arg3: memref<1x4x256xf32, #tpu.memory_space<vmem>>, %arg4: memref<1x1x256xf32, #tpu.memory_space<vmem>>, %arg5: memref<1x1x128xf32, #tpu.memory_space<vmem>>, %arg6: memref<1x4x256xf32, #tpu.memory_space<vmem>>, %arg7: memref<1x1x256xf32, #tpu.memory_space<vmem>>) attributes {dimension_semantics = [#tpu.dimension_semantics<parallel>, #tpu.dimension_semantics<arbitrary>], iteration_bounds = array<i64: 2, 1>, scalar_prefetch = 0 : i64, scratch_operands = 2 : i64, tpu.core_type = #tpu.core_type<tc>, window_params = [{transform_indices = @transform_0, window_bounds = array<i64: 1, 4, 256>}, {transform_indices = @transform_1, window_bounds = array<i64: 1, 4, 256>}, {transform_indices = @transform_2, window_bounds = array<i64: 1, 1, 256>}, {transform_indices = @transform_3, window_bounds = array<i64: 1, 1, 128>}]} {
    %c0_i32 = arith.constant 0 : i32
    %0 = arith.cmpi eq, %arg1, %c0_i32 : i32
    %1 = arith.extui %0 : i1 to i32
    %c0_i32_0 = arith.constant 0 : i32
    %2 = arith.cmpi ne, %1, %c0_i32_0 : i32
    scf.if %2 {
      %cst_27 = arith.constant 0.000000e+00 : f32
      %33 = vector.broadcast %cst_27 : f32 to vector<1x4x256xf32>
      %c0_28 = arith.constant 0 : index
      %c0_29 = arith.constant 0 : index
      %c0_30 = arith.constant 0 : index
      %34 = vector.load %arg6[%c0_28, %c0_29, %c0_30] : memref<1x4x256xf32, #tpu.memory_space<vmem>>, vector<1x4x256xf32>
      tpu.vector_store %arg6[%c0_28, %c0_29, %c0_30], %33 {strides = array<i32>} : memref<1x4x256xf32, #tpu.memory_space<vmem>>, vector<1x4x256xf32>,
      %cst_31 = arith.constant 0.000000e+00 : f32
      %35 = vector.broadcast %cst_31 : f32 to vector<1x1x256xf32>
      %c0_32 = arith.constant 0 : index
      %c0_33 = arith.constant 0 : index
      %c0_34 = arith.constant 0 : index
      %36 = vector.load %arg7[%c0_32, %c0_33, %c0_34] : memref<1x1x256xf32, #tpu.memory_space<vmem>>, vector<1x1x256xf32>
      tpu.vector_store %arg7[%c0_32, %c0_33, %c0_34], %35 {strides = array<i32>} : memref<1x1x256xf32, #tpu.memory_space<vmem>>, vector<1x1x256xf32>,
    } else {
    }
    %c0 = arith.constant 0 : index
    %c0_1 = arith.constant 0 : index
    %c0_2 = arith.constant 0 : index
    %3 = vector.load %arg4[%c0, %c0_1, %c0_2] : memref<1x1x256xf32, #tpu.memory_space<vmem>>, vector<1x1x256xf32>
    %cst = arith.constant 1.000000e+00 : f32
    %4 = vector.broadcast %cst : f32 to vector<1x1x256xf32>
    %5 = arith.cmpf oeq, %3, %4 : vector<1x1x256xf32>
    %c0_3 = arith.constant 0 : index
    %c0_4 = arith.constant 0 : index
    %c0_5 = arith.constant 0 : index
    %6 = vector.load %arg7[%c0_3, %c0_4, %c0_5] : memref<1x1x256xf32, #tpu.memory_space<vmem>>, vector<1x1x256xf32>
    %7 = arith.extui %5 : vector<1x1x256xi1> to vector<1x1x256xi32>
    %8 = arith.sitofp %7 : vector<1x1x256xi32> to vector<1x1x256xf32>
    %9 = arith.addf %6, %8 : vector<1x1x256xf32>
    %c0_6 = arith.constant 0 : index
    %c0_7 = arith.constant 0 : index
    %c0_8 = arith.constant 0 : index
    %10 = vector.load %arg7[%c0_6, %c0_7, %c0_8] : memref<1x1x256xf32, #tpu.memory_space<vmem>>, vector<1x1x256xf32>
    tpu.vector_store %arg7[%c0_6, %c0_7, %c0_8], %9 {strides = array<i32>} : memref<1x1x256xf32, #tpu.memory_space<vmem>>, vector<1x1x256xf32>,
    %c0_9 = arith.constant 0 : index
    %c0_10 = arith.constant 0 : index
    %c0_11 = arith.constant 0 : index
    %11 = vector.load %arg2[%c0_9, %c0_10, %c0_11] : memref<1x4x256xf32, #tpu.memory_space<vmem>>, vector<1x4x256xf32>
    %c0_12 = arith.constant 0 : index
    %c0_13 = arith.constant 0 : index
    %c0_14 = arith.constant 0 : index
    %12 = vector.load %arg3[%c0_12, %c0_13, %c0_14] : memref<1x4x256xf32, #tpu.memory_space<vmem>>, vector<1x4x256xf32>
    %13 = arith.subf %11, %12 : vector<1x4x256xf32>
    %14 = math.absf %13 : vector<1x4x256xf32>
    %cst_15 = arith.constant 1.000000e+00 : f32
    %15 = vector.broadcast %cst_15 : f32 to vector<1x4x256xf32>
    %16 = arith.cmpf olt, %14, %15 : vector<1x4x256xf32>
    %cst_16 = arith.constant 5.000000e-01 : f32
    %17 = vector.broadcast %cst_16 : f32 to vector<1x4x256xf32>
    %18 = arith.mulf %17, %13 : vector<1x4x256xf32>
    %19 = arith.mulf %18, %13 : vector<1x4x256xf32>
    %cst_17 = arith.constant 5.000000e-01 : f32
    %20 = vector.broadcast %cst_17 : f32 to vector<1x4x256xf32>
    %21 = arith.subf %14, %20 : vector<1x4x256xf32>
    %22 = arith.select %16, %19, %21 : vector<1x4x256xi1>, vector<1x4x256xf32>
    %c0_18 = arith.constant 0 : index
    %c0_19 = arith.constant 0 : index
    %c0_20 = arith.constant 0 : index
    %23 = vector.load %arg6[%c0_18, %c0_19, %c0_20] : memref<1x4x256xf32, #tpu.memory_space<vmem>>, vector<1x4x256xf32>
    %cst_21 = arith.constant 0.000000e+00 : f32
    %24 = vector.shape_cast %5 : vector<1x1x256xi1> to vector<1x1x256xi1>
    %25 = vector.broadcast %24 : vector<1x1x256xi1> to vector<1x4x256xi1>
    %26 = vector.broadcast %cst_21 : f32 to vector<1x4x256xf32>
    %27 = arith.select %25, %22, %26 : vector<1x4x256xi1>, vector<1x4x256xf32>
    %28 = arith.addf %23, %27 : vector<1x4x256xf32>
    %c0_22 = arith.constant 0 : index
    %c0_23 = arith.constant 0 : index
    %c0_24 = arith.constant 0 : index
    %29 = vector.load %arg6[%c0_22, %c0_23, %c0_24] : memref<1x4x256xf32, #tpu.memory_space<vmem>>, vector<1x4x256xf32>
    tpu.vector_store %arg6[%c0_22, %c0_23, %c0_24], %28 {strides = array<i32>} : memref<1x4x256xf32, #tpu.memory_space<vmem>>, vector<1x4x256xf32>,
    %c0_i32_25 = arith.constant 0 : i32
    %30 = arith.cmpi eq, %arg1, %c0_i32_25 : i32
    %31 = arith.extui %30 : i1 to i32
    %c0_i32_26 = arith.constant 0 : i32
    %32 = arith.cmpi ne, %31, %c0_i32_26 : i32
    scf.if %32 {
      %c0_27 = arith.constant 0 : index
      %c0_28 = arith.constant 0 : index
      %c0_29 = arith.constant 0 : index
      %33 = vector.load %arg6[%c0_27, %c0_28, %c0_29] : memref<1x4x256xf32, #tpu.memory_space<vmem>>, vector<1x4x256xf32>
      %34 = vector.shape_cast %33 : vector<1x4x256xf32> to vector<1x1x4x256xf32>
      %cst_30 = arith.constant dense<0.000000e+00> : vector<1xf32>
      %35 = vector.multi_reduction <add>, %34, %cst_30 [1, 2, 3] : vector<1x1x4x256xf32> to vector<1xf32>
      %36 = vector.shape_cast %35 : vector<1xf32> to vector<1x1x1x1xf32>
      %37 = vector.extract %36[0, 0, 0, 0] : f32 from vector<1x1x1x1xf32>
      %c0_31 = arith.constant 0 : index
      %c0_32 = arith.constant 0 : index
      %c0_33 = arith.constant 0 : index
      %38 = vector.load %arg7[%c0_31, %c0_32, %c0_33] : memref<1x1x256xf32, #tpu.memory_space<vmem>>, vector<1x1x256xf32>
      %39 = vector.shape_cast %38 : vector<1x1x256xf32> to vector<1x1x1x256xf32>
      %cst_34 = arith.constant dense<0.000000e+00> : vector<1xf32>
      %40 = vector.multi_reduction <add>, %39, %cst_34 [1, 2, 3] : vector<1x1x1x256xf32> to vector<1xf32>
      %41 = vector.shape_cast %40 : vector<1xf32> to vector<1x1x1x1xf32>
      %42 = vector.extract %41[0, 0, 0, 0] : f32 from vector<1x1x1x1xf32>
      %cst_35 = arith.constant 4.000000e+00 : f32
      %43 = arith.mulf %cst_35, %42 : f32
      %44 = tpu.iota {dimensions = array<i32: 2>} : vector<1x1x128xi32>
      %c0_i32_36 = arith.constant 0 : i32
      %45 = vector.broadcast %c0_i32_36 : i32 to vector<1x1x128xi32>
      %46 = arith.cmpi eq, %44, %45 : vector<1x1x128xi32>
      %cst_37 = arith.constant 0.000000e+00 : f32
      %47 = vector.broadcast %37 : f32 to vector<1x1x128xf32>
      %48 = vector.broadcast %cst_37 : f32 to vector<1x1x128xf32>
      %49 = arith.select %46, %47, %48 : vector<1x1x128xi1>, vector<1x1x128xf32>
      %c1_i32 = arith.constant 1 : i32
      %50 = vector.broadcast %c1_i32 : i32 to vector<1x1x128xi32>
      %51 = arith.cmpi eq, %44, %50 : vector<1x1x128xi32>
      %cst_38 = arith.constant 0.000000e+00 : f32
      %52 = vector.broadcast %43 : f32 to vector<1x1x128xf32>
      %53 = vector.broadcast %cst_38 : f32 to vector<1x1x128xf32>
      %54 = arith.select %51, %52, %53 : vector<1x1x128xi1>, vector<1x1x128xf32>
      %55 = arith.addf %49, %54 : vector<1x1x128xf32>
      %c0_39 = arith.constant 0 : index
      %c0_40 = arith.constant 0 : index
      %c0_41 = arith.constant 0 : index
      %56 = vector.load %arg5[%c0_39, %c0_40, %c0_41] : memref<1x1x128xf32, #tpu.memory_space<vmem>>, vector<1x1x128xf32>
      tpu.vector_store %arg5[%c0_39, %c0_40, %c0_41], %55 {strides = array<i32>} : memref<1x1x128xf32, #tpu.memory_space<vmem>>, vector<1x1x128xf32>,
    } else {
    }
    return
  }
  func.func @transform_0(%arg0: i32, %arg1: i32) -> (i32, i32, i32) {
    %c0_i32 = arith.constant 0 : i32
    %c0_i32_0 = arith.constant 0 : i32
    return %arg0, %c0_i32, %arg1 : i32, i32, i32
  }
  func.func @transform_1(%arg0: i32, %arg1: i32) -> (i32, i32, i32) {
    %c0_i32 = arith.constant 0 : i32
    %c0_i32_0 = arith.constant 0 : i32
    return %arg0, %c0_i32, %arg1 : i32, i32, i32
  }
  func.func @transform_2(%arg0: i32, %arg1: i32) -> (i32, i32, i32) {
    %c0_i32 = arith.constant 0 : i32
    %c0_i32_0 = arith.constant 0 : i32
    return %arg0, %c0_i32, %arg1 : i32, i32, i32
  }
  func.func @transform_3(%arg0: i32, %arg1: i32) -> (i32, i32, i32) {
    %c0_i32 = arith.constant 0 : i32
    %c0_i32_0 = arith.constant 0 : i32
    %c0_i32_1 = arith.constant 0 : i32
    return %arg0, %c0_i32, %c0_i32_0 : i32, i32, i32
  }
}

</mosaic_0001>

<bundles_post_ra>
// kernel: tpu_custom_call.1
= control target key start
LH: loop header
LB: loop body
LE: loop exit
PB: predicated region body
PF: predicated region fallthrough
CT: control target
= control target key end

     0   :  { %8 = vsyncpa [#allocation5], 0  ;;  %s1023_s0 = inlined_call_operand.hbm [shape: f32[2,4,256], index: 0, kind: input, shape index: {}]   ;;  %s1024_s1 = inlined_call_operand.hbm [shape: f32[2,4,256], index: 1, kind: input, shape index: {}]   ;;  %s1025_s2 = inlined_call_operand.vmem [shape: f32[2,1,256], index: 2, kind: input, shape index: {}]   ;;  %s1026_s3 = inlined_call_operand.hbm [shape: f32[2,1,128], index: 3, kind: output, shape index: {}]  }
   0x1   :  { %10 = vsyncpa [#allocation5 + $0x1], 0 }
   0x2   :  { %11 = vsyncpa [#allocation8], 0 }
   0x3   :  { %13 = vsyncpa [#allocation8 + $0x1], 0 }
   0x4   :  { %14 = vsyncpa [#allocation6], 0 }
   0x5   :  { %16 = vsyncpa [#allocation6 + $0x1], 0  ;;  %s786_s12 = smov 0   ;;  %s788_s13 = smov 0  }
   0x6   :  { %s790_s14 = smov 0   ;;  %s792_s15 = smov 0  }
   0x7   :  { %s794_s16 = smov 0   ;;  %s796_s17 = smov 0  }
   0x8 LB: > { %s518_s18 = sadd.s32 4294967295, %s759_s17   ;;  %s519_s19 = sadd.s32 4294967294, %s759_s17   ;;  %s759_s17 = sphi %s796_s17, %s22_s17   ;;  %s755_s16 = sphi %s794_s16, %s1048_s16   ;;  %s751_s15 = sphi %s792_s15, %s1047_s15   ;;  %s747_s14 = sphi %s790_s14, %s1046_s14   ;;  %s743_s13 = sphi %s788_s13, %s1045_s13   ;;  %s739_s12 = sphi %s786_s12, %s1044_s12  }
   0x9   : > { %s34_s20 = sadd.s32 1, %s755_s16  ;;  %s43_s21 = sadd.s32 1, %s747_s14 }
   0xa   : > { %p36_p0 = scmp.ge.s32.totalorder %s34_s20, 2  ;;  %p50_p1 = scmp.ne.s32.totalorder %s747_s14, %s743_s13 }
   0xb   : > { %p51_p2 = scmp.eq.s32.totalorder %s759_s17, 0  ;;  %p56_p3 = scmp.ne.s32.totalorder %s743_s13, %s739_s12 }
   0xc   : > { %s1050_s20 = smov (%p36_p0, %s34_s20), 0  ;;  %p57_p5 = scmp.eq.s32.totalorder %s518_s18, 0 }
   0xd   : > { %p827_p4 = por %p51_p2, %p50_p1  ;;  %s38_s23 = ssub.s32 %s755_s16, %s1050_s20 }
   0xe   : > { %p136_p6 = scmp.eq.s32.totalorder %s518_s18, 1  ;;  %p41_p7 = scmp.eq.s32.totalorder %s38_s23, 0 }
   0xf   : > { %p833_p8 = por %p57_p5, %p56_p3  ;;  %p142_p10 = scmp.eq.s32.totalorder %s519_s19, 1 }
  0x10   : > { %p837_p9 = por %p136_p6, %p50_p1  ;;  %p561_p13 = scmp.lt.s32.totalorder %s759_s17, 2 }
  0x11   : > { %s1030_s24 = scalar_select %p833_p8, 1, 0 }
  0x12   : > { %s1031_s25 = scalar_select %p837_p9, 1, 0 }
  0x13   : > { %s842_s26 = scalar_select %p41_p7, %s747_s14, %s43_s21  }
  0x14   : > { %p844_p11 = por %p142_p10, %p56_p3  ;;  %s851_s28 = sand.u32 1, %s747_s14  }
  0x15   : > { %s522_s29 = sshll.u32 %s851_s28, 3  ;;  %s537_s30 = sshll.u32 %s755_s16, 7 }
  0x16   : > { %s1032_s27 = scalar_select %p844_p11, 1, 0 }
  0x17   : > { %s860_s6 = scalar_lea.hbm %s1023_s0, %s537_s30  ;;  %s166_s7 = scalar_lea.vmem [#allocation4], %s522_s29 }
  0x18   : > { %s176_s8 = sshll.u32 %s166_s7, 4  ;;  %p868_p0 = pnand %p561_p13, %p827_p4  ;;  %s864_s8 = int_to_ptr.vmem [resolvable:$true] %s176_s8 }
  0x19   : > { %s163_s10 = scalar_lea.sflag [#allocation5], %s851_s28  ;;  %s613_s11 = scalar_lea.hbm %s860_s6, 128 }
  0x1a   : > { %p614_p3 = scmp.ne.s32.totalorder %s860_s6, %s613_s11  ;;  %p615_p5 = pneg %p868_p0 }
  0x1b   : > { %s618_s21 = scalar_lea.hbm %s1023_s0, 256  ;;  %p619_p4 = scmp.lt.u32.totalorder %s860_s6, %s1023_s0 }
  0x1c   : > { %p616_p6 = pnand %p615_p5, %p614_p3  ;;  %p620_p10 = scmp.lt.u32.totalorder %s618_s21, %s613_s11 }
  0x1d   : > { %p622_p12 = scmp.lt.u32.totalorder %s613_s11, %s860_s6 }
  0x1e   : > { %p617_p7 = pneg %p616_p6  ;;  %p621_p13 = por %p620_p10, %p619_p4 }
  0x20   : > { %p623_p1 = por %p622_p12, %p621_p13 }
  0x22   : > { %p624_p2 = pnand %p623_p1, %p617_p7 }
  0x24   : > { %627 = shalt.err (!%p624_p2)
}
  0x25   : > { %s628_s4 = scalar_lea.vmem %s864_s8, 128  ;;  %s761_s5 = smov [#allocation4]  }
  0x26   : > { %p629_p3 = scmp.ne.s32.totalorder %s864_s8, %s628_s4  ;;  %s633_s7 = sshll.u32 %s761_s5, 4  ;;  %s634_s7 = int_to_ptr.vmem [resolvable:$false] %s633_s7 }
  0x27   : > { %s635_s18 = scalar_lea.vmem %s634_s7, 256  ;;  %p636_p9 = scmp.lt.s32.totalorder %s864_s8, %s634_s7 }
  0x28   : > { %p631_p6 = pnand %p629_p3, %p615_p5  ;;  %p637_p4 = scmp.lt.s32.totalorder %s635_s18, %s628_s4 }
  0x2a   : > { %p632_p11 = pneg %p631_p6  ;;  %p638_p10 = por %p637_p4, %p636_p9 }
  0x2c   : > { %p639_p12 = pnand %p638_p10, %p632_p11 }
  0x2e   : > { %642 = shalt.err (!%p639_p12)
}
  0x2f   : > { %553 = dma.hbm_to_vmem [thread:$0]  (!%p868_p0), %s860_s6, 128, %s864_s8, %s163_s10  }
  0x30   : > { %p1034_p1 = scmp.lt.s32.totalorder %s759_s17, 3  ;;  %p1035_p2 = scmp.ge.s32.totalorder %s759_s17, 1 }
  0x31   : > { %s913_s22 = scalar_lea.hbm %s1024_s1, %s537_s30  ;;  %s187_s23 = scalar_lea.vmem [#allocation7], %s522_s29 }
  0x32   : > { %p904_p7 = pnand %p1035_p2, %p1034_p1  ;;  %s197_s4 = sshll.u32 %s187_s23, 4  ;;  %s198_s4 = int_to_ptr.vmem [resolvable:$true] %s197_s4 }
  0x33   : > { %s184_s6 = scalar_lea.sflag [#allocation8], %s851_s28  ;;  %s643_s8 = scalar_lea.hbm %s913_s22, 128 }
  0x34   : > { %s1036_s11 = scalar_select %p904_p7, 1, 0 }
  0x35   : > { %p644_p9 = scmp.ne.s32.totalorder %s913_s22, %s643_s8  ;;  %s648_s30 = scalar_lea.hbm %s1024_s1, 256 }
  0x36   : > { %p649_p3 = scmp.lt.u32.totalorder %s913_s22, %s1024_s1  ;;  %p650_p6 = scmp.lt.u32.totalorder %s648_s30, %s643_s8 }
  0x37   : > { %p646_p11 = pnand %p644_p9, %p615_p5  ;;  %p652_p10 = scmp.lt.u32.totalorder %s643_s8, %s913_s22 }
  0x38   : > { %p651_p4 = por %p650_p6, %p649_p3 }
  0x39   : > { %p647_p13 = pneg %p646_p11 }
  0x3a   : > { %p653_p12 = por %p652_p10, %p651_p4 }
  0x3c   : > { %p654_p1 = pnand %p653_p12, %p647_p13 }
  0x3e   : > { %657 = shalt.err (!%p654_p1)
}
  0x3f   : > { %s658_s28 = scalar_lea.vmem %s198_s4, 128  ;;  %s762_s29 = smov [#allocation7]  }
  0x40   : > { %p659_p2 = scmp.ne.s32.totalorder %s198_s4, %s658_s28  ;;  %s663_s19 = sshll.u32 %s762_s29, 4  ;;  %s664_s19 = int_to_ptr.vmem [resolvable:$false] %s663_s19 }
  0x41   : > { %s665_s21 = scalar_lea.vmem %s664_s19, 256  ;;  %p666_p8 = scmp.lt.s32.totalorder %s198_s4, %s664_s19 }
  0x42   : > { %p661_p9 = pnand %p659_p2, %p615_p5  ;;  %p667_p7 = scmp.lt.s32.totalorder %s665_s21, %s658_s28 }
  0x44   : > { %p662_p11 = pneg %p661_p9  ;;  %p668_p3 = por %p667_p7, %p666_p8 }
  0x46   : > { %p669_p6 = pnand %p668_p3, %p662_p11 }
  0x48   : > { %672 = shalt.err (!%p669_p6)
}
  0x49   : > { %556 = dma.hbm_to_vmem [thread:$0]  (!%p868_p0), %s913_s22, 128, %s198_s4, %s184_s6  }
  0x4a   : > { %p1037_p13 = scmp.ne.s32.totalorder %s1036_s11, 0 }
  0x4b   : > { %s940_s23 = sand.u32 (!%p1037_p13), 1, %s743_s13   ;;  %p1038_p5 = scmp.ne.s32.totalorder (!%p1037_p13), %s1030_s24, 0 }
  0x4c   : > { %218 = sbr.rel (%p1037_p13) target bundleno = 336 (0x150), region = 32  ;;  %s529_s8 = sshll.u32 (!%p1037_p13), %s940_s23, 3 }
  0x4d   : > { %s221_s10 = scalar_lea.sflag (!%p1037_p13), [#allocation5], %s940_s23  ;;  %s224_s5 = scalar_lea.vmem (!%p1037_p13), [#allocation4], %s529_s8 }
  0x53   : > { %726 = dma.done.wait (%p1038_p5), %s221_s10, 128  }
  0x54   : > { %728 = vsyncadd (%p1038_p5), %s221_s10, 4294967168  ;;  %s230_s9 = scalar_lea.sflag [#allocation8], %s940_s23  ;;  %s233_s22 = scalar_lea.vmem [#allocation7], %s529_s8 }
  0x55   : > { %730 = dma.done.wait (%p1038_p5), %s230_s9, 128  }
  0x56   : > { %732 = vsyncadd (%p1038_p5), %s230_s9, 4294967168  ;;  %p271_p8 = scmp.lt.s32.totalorder %s751_s15, 1  ;;  %v284_v0 = vlaneseq  ;;  %v763_v3 = vmov 0.0   ;;  %v300_v7 = vld [vmem:[%s224_s5] sm:$0xff]  ;;  %v301_v8 = vld [vmem:[%s233_s22] sm:$0xff]  ;;  %v764_v10 = vmov 0  }
  0x57   : > { %v302_v9 = vsub.f32 %v300_v7, %v301_v8  ;;  %vm338_vm5 = vcmask 1043456   ;;  %vm363_vm6 = vcmask 1040384   ;;  %s534_s29 = sshll.u32 %s751_s15, 4  ;;  %s267_s19 = scalar_lea.vmem [#allocation9], %s940_s23 }
  0x58   : > { %s272_s11 = scalar_select %p271_p8, %s751_s15, 1  ;;  %vm956_vm0 = vcmp.lt.s32.totalorder %v284_v0, 256  ;;  %v311_v2 = vshrl.u32 %v284_v0, 7  ;;  %v378_v50 = vand.u32 127, %v284_v0 }
  0x59   : > { %288 = vst.msk [vmem:[#allocation3] sm:$0x3] %vm956_vm0, %v763_v3  ;;  %v303_v13 = vand.u32 2147483647, %v302_v9  ;;  %v305_v14 = vmul.f32 0.5, %v302_v9  ;;  %s400_s21 = sshll.u32 %s267_s19, 4  ;;  %s974_s5 = scalar_lea.hbm %s1026_s3, %s534_s29  ;;  %s976_s21 = int_to_ptr.vmem [resolvable:$true] %s400_s21 }
  0x5a   : > { %s531_s4 = sshll.u32 %s272_s11, 1  ;;  %v312_v4 = vsub.s32 0, %v311_v2  ;;  %v316_v5 = vsub.s32 1, %v311_v2  ;;  %vm379_vm7 = vcmp.eq.s32.totalorder %v378_v50, 0  ;;  %vm382_vm8 = vcmp.eq.s32.totalorder %v378_v50, 1  ;;  %s388_s9 = scalar_lea.sflag [#allocation6], %s940_s23 }
  0x5b   : > { %s277_s30 = scalar_lea.vmem %s1025_s2, %s531_s4  ;;  %vm304_vm2 = vcmp.lt.f32.partialorder %v303_v13, 1.0  ;;  %v306_v19 = vmul.f32 %v305_v14, %v302_v9  ;;  %v533_v20 = vadd.f32 -0.5, %v303_v13  ;;  %s673_s22 = scalar_lea.vmem %s976_s21, 16 }
  0x5c   : > { %v289_v6 = vld [vmem:[%s277_s30] sm:$0x3]  ;;  %p674_p0 = scmp.ne.s32.totalorder %s976_s21, %s673_s22  ;;  %p1041_p7 = scmp.ne.s32.totalorder %s1031_s25, 0 }
  0x5d   : > { %vm290_vm1 = vcmp.eq.f32.partialorder %v289_v6, 1.0  ;;  %v308_v21 = vsel %vm304_vm2, %v306_v19, %v533_v20  ;;  %s765_s15 = smov [#allocation9]  }
  0x5e   : > { %v292_v11 = vsel %vm290_vm1, 1, %v764_v10  ;;  %v532_v12 = vsel %vm290_vm1, 1.0, %v763_v3  ;;  %v321_v22 = vcombine.high %v308_v21, %v308_v21  ;;  %p675_p4 = pnand %p674_p0, %p1041_p7  ;;  %s677_s11 = sshll.u32 %s765_s15, 4  ;;  %s678_s11 = int_to_ptr.vmem [resolvable:$false] %s677_s11 }
  0x5f   : > { %v313_v15 = vrot.slane %v292_v11, %v312_v4  ;;  %v317_v16 = vrot.slane %v292_v11, %v316_v5  ;;  %s679_s4 = scalar_lea.vmem %s678_s11, 32  ;;  %p680_p12 = scmp.lt.s32.totalorder %s976_s21, %s678_s11 }
  0x60   : > { %v291_v17 = vld [vmem:[#allocation3] sm:$0x3]  ;;  %p676_p10 = pneg %p675_p4  ;;  %p681_p1 = scmp.lt.s32.totalorder %s679_s4, %s673_s22 }
  0x61   : > { %v294_v18 = vadd.f32 %v532_v12, %v291_v17  ;;  %vm318_vm3 = vcmp.eq.s32.totalorder %v313_v15, 1  ;;  %vm319_vm4 = vcmp.eq.s32.totalorder %v317_v16, 1 }
  0x62   : > { %v323_v23 = vsel %vm318_vm3, %v308_v21, 0.0  ;;  %v324_v24 = vsel %vm319_vm4, %v321_v22, 0.0  ;;  %p682_p2 = por %p681_p1, %p680_p12 }
  0x63   : > { %299 = vst.msk [vmem:[#allocation3] sm:$0x3] %vm956_vm0, %v294_v18  ;;  %v327_v25 = vcombine.low %v323_v23, %v324_v24  ;;  %v539_v26 = vcombine.low %v324_v24, %v324_v24 }
  0x64   : > { %p683_p9 = pnand %p682_p2, %p676_p10 }
  0x65   : > { %v339_v27 = vsel %vm338_vm5, %v327_v25, 0.0  ;;  %v340_v28 = vsel %vm338_vm5, %v539_v26, 0.0 }
  0x66   : > { %v341_v30 = vadd.f32 %v340_v28, %v339_v27 }
  0x68   : > { %342 = vadd.xlane.f32.xlu0 %v341_v30 }
  0x6a   : > { %v351_v29 = vld [vmem:[#allocation3] sm:$0x3] }
  0x6b   : > { %v356_v31 = vrot.slane %v351_v29, %v312_v4  ;;  %v360_v32 = vrot.slane %v351_v29, %v316_v5 }
  0x6d   : > { %v364_v33 = vsel %vm363_vm6, %v356_v31, 0.0  ;;  %v365_v34 = vsel %vm363_vm6, %v360_v32, 0.0 }
  0x6e   : > { %v366_v35 = vadd.f32 %v365_v34, %v364_v33 }
  0x70   : > { %367 = vadd.xlane.f32.xlu0 %v366_v35 }
  0xf5   : > { %v343_v36 = vpop.xlane.xlu0 %342 }
  0xf6   : > { %v344_v37 = vrot.slane %v343_v36, 4 }
  0xf8   : > { %v345_v38 = vadd.f32 %v344_v37, %v343_v36 }
  0xfa   : > { %v346_v40 = vrot.slane %v345_v38, 2 }
  0xfc   : > { %v347_v43 = vadd.f32 %v346_v40, %v345_v38 }
  0xfd   : > { %v368_v39 = vpop.xlane.xlu0 %367 }
  0xfe   : > { %v369_v41 = vrot.slane %v368_v39, 4  ;;  %v348_v45 = vrot.slane %v347_v43, 1 }
 0x100   : > { %v370_v42 = vadd.f32 %v369_v41, %v368_v39  ;;  %v349_v47 = vadd.f32 %v348_v45, %v347_v43 }
 0x102   : > { %v371_v44 = vrot.slane %v370_v42, 2  ;;  %540 = vpush %v349_v47 }
 0x104   : > { %v372_v46 = vadd.f32 %v371_v44, %v370_v42 }
 0x106   : > { %v373_v48 = vrot.slane %v372_v46, 1 }
 0x108   : > { %v374_v49 = vadd.f32 %v373_v48, %v372_v46 }
 0x10a   : > { %542 = vpush %v374_v49 }
 0x133   : > { %s541_s7 = spop %540 }
 0x134   : > { %v380_v51 = vstv %s541_s7 }
 0x135   : > { %v381_v53 = vsel %vm379_vm7, %v380_v51, 0.0 }
 0x13b   : > { %s543_s18 = spop %542 }
 0x13c   : > { %s376_s28 = smul.f32 4.0, %s543_s18 }
 0x13e   : > { %v383_v52 = vstv %s376_s28 }
 0x13f   : > { %v384_v54 = vsel %vm382_vm8, %v383_v52, 0.0 }
 0x140   : > { %v385_v55 = vadd.f32 %v384_v54, %v381_v53 }
 0x142   : > { %386 = vst [vmem:[%s267_s19] sm:$0x1] %v385_v55 }
 0x143   : > { %686 = shalt.err (!%p683_p9)
}
 0x144   : > { %s687_s23 = scalar_lea.hbm %s974_s5, 16  ;;  %s691_s30 = scalar_lea.hbm %s1026_s3, 32 }
 0x145   : > { %p688_p11 = scmp.ne.s32.totalorder %s974_s5, %s687_s23  ;;  %p692_p13 = scmp.lt.u32.totalorder %s974_s5, %s1026_s3 }
 0x146   : > { %p693_p5 = scmp.lt.u32.totalorder %s691_s30, %s687_s23  ;;  %p695_p0 = scmp.lt.u32.totalorder %s687_s23, %s974_s5 }
 0x147   : > { %p689_p3 = pnand %p688_p11, %p1041_p7 }
 0x148   : > { %p694_p8 = por %p693_p5, %p692_p13 }
 0x149   : > { %p690_p6 = pneg %p689_p3 }
 0x14a   : > { %p696_p4 = por %p695_p0, %p694_p8 }
 0x14c   : > { %p697_p10 = pnand %p696_p4, %p690_p6 }
 0x14e   : > { %700 = shalt.err (!%p697_p10)
}
 0x14f   : > { %548 = dma.vmem_to_hbm [thread:$0]  (%p1041_p7), %s976_s21, 16, %s974_s5, %s388_s9  }
 0x150 PF: > { %s412_s28 = sand.u32 1, %s739_s12   ;;  %p1042_p12 = scmp.ne.s32.totalorder %s1032_s27, 0 }
 0x151   : > { %p1043_p1 = scmp.ge.s32.totalorder %s759_s17, 2  ;;  %s413_s29 = scalar_lea.sflag [#allocation6], %s412_s28 }
 0x153   : > { %p558_p2 = pnand %p1043_p1, %p1042_p12 }
 0x155   : > { %734 = dma.done.wait (!%p558_p2), %s413_s29, 16  }
 0x156   : > { %736 = vsyncadd (!%p558_p2), %s413_s29, 4294967280  ;;  %s22_s17 = sadd.s32 1, %s759_s17   ;;  %s1044_s12 = smov %s743_s13 }
 0x157   : > { %p19_p9 = scmp.ge.s32.totalorder %s22_s17, 4   ;;  %s1045_s13 = smov %s747_s14 }
 0x158   : > { %s1046_s14 = smov %s842_s26  ;;  %s1047_s15 = smov %s755_s16 }
 0x159   : > { %s1048_s16 = smov %s1050_s20  ;;  %21 = sbr.rel (!%p19_p9) target bundleno = 8 (0x8), region = 101 }
 0x160   :  { %417 = vsyncpa [#allocation5], 1 }
 0x161   :  { %419 = vsyncpa [#allocation5 + $0x1], 1 }
 0x162   :  { %420 = vsyncpa [#allocation8], 1 }
 0x163   :  { %422 = vsyncpa [#allocation8 + $0x1], 1 }
 0x164   :  { %423 = vsyncpa [#allocation6], 1 }
 0x165   :  { %425 = vsyncpa [#allocation6 + $0x1], 1 }

</bundles_post_ra>
